<compile_context>
chip_gen: v6e
topology: v6e:2x2x1
jax: 0.10.0
libtpu: 0.0.40
codegen_flags: <defaults>
</compile_context>

<pallas_src>
import math

import jax
import jax.numpy as jnp
from jax.experimental import pallas as pl
from jax.experimental.pallas import tpu as pltpu

_VMEM_CAP = 48 * 1024 * 1024   # safe on v5e/v6e (128 MiB) and v7x (64 MiB) alike


# ----------------------------------------------------------------------------- kernels
def _linear_kernel(x_ref, w_ref, b_ref, o_ref):
    """o = x @ w + b   (x cast to the weight dtype for the MXU, f32 accumulation)."""
    x = x_ref[...]
    if x.dtype != w_ref.dtype:
        x = x.astype(w_ref.dtype)
    acc = jnp.dot(x, w_ref[...], preferred_element_type=jnp.float32) + b_ref[...]
    o_ref[...] = acc.astype(o_ref.dtype)


def _joint_kernel(img_ref, q1_ref, w_ref, b_ref, o_ref):
    """o = (img @ w + b) * q1.

    img_ref : (TM, D_img)           bf16 (or f32; cast once if needed)
    q1_ref  : (1, tn) or (TM, tn)   f32 precomputed ques1 slice (broadcasts over TM)
    w_ref   : (D_img, tn)           bf16 transposed weight slice (resident per N-tile)
    b_ref   : (1, tn)               f32
    o_ref   : (TM, tn)              bf16
    """
    img = img_ref[...]
    if img.dtype != w_ref.dtype:
        img = img.astype(w_ref.dtype)
    image1 = jnp.dot(img, w_ref[...], preferred_element_type=jnp.float32) + b_ref[...]
    o_ref[...] = (image1 * q1_ref[...]).astype(o_ref.dtype)


# ----------------------------------------------------------------------------- helpers
def _pad_last(x, target):
    pad = target - x.shape[-1]
    if pad == 0:
        return x
    return jnp.pad(x, [(0, 0)] * (x.ndim - 1) + [(0, pad)])


def _divisor_tiles(extent, candidates):
    """Candidate tile sizes (largest first) that exactly divide `extent`."""
    tiles = [c for c in candidates if c <= extent and extent % c == 0]
    return tiles if tiles else [extent]


def _est_vmem(tm, tn, d_img, img_bytes, out_bytes):
    """Double-buffered VMEM footprint estimate for one grid step of the main kernel."""
    per_step = (tm * d_img * img_bytes   # image tile
                + tm * tn * out_bytes    # output tile
                + d_img * tn * 2         # bf16 weight N-slice
                + tn * 4                 # bias slice
                + max(tm, 1) * tn * 4)   # ques1 slice
    return 2 * per_step


def _pick_tiles(m_extent, hp, d_img, img_bytes, out_bytes):
    m_cands = _divisor_tiles(m_extent, (512, 256, 128, 64, 32, 16))
    n_cands = _divisor_tiles(hp, (1024, 512, 256, 128))
    mi, ni = 0, 0
    while (_est_vmem(m_cands[mi], n_cands[ni], d_img, img_bytes, out_bytes)
           + (4 << 20) > _VMEM_CAP):
        if mi + 1 < len(m_cands):
            mi += 1
        elif ni + 1 < len(n_cands):
            ni += 1
        else:
            break
    tm, tn = m_cands[mi], n_cands[ni]
    vmem_limit = min(_VMEM_CAP,
                     max(_est_vmem(tm, tn, d_img, img_bytes, out_bytes) + (8 << 20),
                         16 << 20))
    return tm, tn, vmem_limit


def _compute_ques1(question_embed, w_q, b_q, tn):
    """ques1 = question_embed @ W_q + b_q, batch rows on sublanes, f32 output."""
    B, d_txt = question_embed.shape
    hp = w_q.shape[-1]
    return pl.pallas_call(
        _linear_kernel,
        grid=(hp // tn,),
        in_specs=[
            pl.BlockSpec((B, d_txt), lambda h: (0, 0)),
            pl.BlockSpec((d_txt, tn), lambda h: (0, h)),
            pl.BlockSpec((1, tn), lambda h: (0, h)),
        ],
        out_specs=pl.BlockSpec((B, tn), lambda h: (0, h)),
        out_shape=jax.ShapeDtypeStruct((B, hp), jnp.float32),
        compiler_params=pltpu.CompilerParams(
            dimension_semantics=("parallel",)),
    )(question_embed, w_q, b_q)


# ----------------------------------------------------------------------------- wrapper
def mfb_expand_forward(params, image_feat, question_embed, out_dtype=jnp.bfloat16):
    """Forward pass of MfbExpand (inference; dropout is identity)."""
    squeeze = image_feat.ndim == 2
    B = image_feat.shape[0]
    d_img = image_feat.shape[-1]
    H = params["b_img"].shape[-1]

    # Pad hidden dim to a multiple of 128 -> lane-dense (unmasked) output stores.
    hp = ((H + 127) // 128) * 128
    w_img = _pad_last(params["w_img_t"], hp)
    b_img = _pad_last(params["b_img"], hp)
    w_q = _pad_last(params["w_q_t"], hp)
    b_q = _pad_last(params["b_q"], hp)

    img_bytes = jnp.dtype(image_feat.dtype).itemsize
    out_bytes = jnp.dtype(out_dtype).itemsize

    if squeeze:
        # ---- 2-D path: batch mapped onto sublanes (M = TB rows per MXU pass) ----
        tb, tn, vmem_limit = _pick_tiles(B, hp, d_img, img_bytes, out_bytes)
        assert B % tb == 0 and hp % tn == 0
        ques1 = _compute_ques1(question_embed, w_q, b_q, tn)          # (B, hp) f32
        out = pl.pallas_call(
            _joint_kernel,
            grid=(B // tb, hp // tn),
            in_specs=[
                pl.BlockSpec((tb, d_img), lambda i, h: (i, 0)),
                pl.BlockSpec((tb, tn), lambda i, h: (i, h)),
                pl.BlockSpec((d_img, tn), lambda i, h: (0, h)),
                pl.BlockSpec((1, tn), lambda i, h: (0, h)),
            ],
            out_specs=pl.BlockSpec((tb, tn), lambda i, h: (i, h)),
            out_shape=jax.ShapeDtypeStruct((B, hp), out_dtype),
            compiler_params=pltpu.CompilerParams(
                dimension_semantics=("parallel", "parallel"),
                vmem_limit_bytes=vmem_limit,
            ),
        )(image_feat, ques1, w_img, b_img)
        return out[:, :H] if hp != H else out

    # ---- 3-D path: grid = (batch, location-tiles, hidden-tiles), all parallel ----
    L = image_feat.shape[1]
    tl, tn, vmem_limit = _pick_tiles(L, hp, d_img, img_bytes, out_bytes)
    assert L % tl == 0 and hp % tn == 0, "tile selection must evenly divide extents"

    ques1 = _compute_ques1(question_embed, w_q, b_q, tn)              # (B, hp) f32
    ques1_3d = ques1.reshape(B, 1, hp)

    out = pl.pallas_call(
        _joint_kernel,
        grid=(B, L // tl, hp // tn),
        in_specs=[
            pl.BlockSpec((None, tl, d_img), lambda b, l, h: (b, l, 0)),
            pl.BlockSpec((None, 1, tn), lambda b, l, h: (b, 0, h)),
            pl.BlockSpec((d_img, tn), lambda b, l, h: (0, h)),
            pl.BlockSpec((1, tn), lambda b, l, h: (0, h)),
        ],
        out_specs=pl.BlockSpec((None, tl, tn), lambda b, l, h: (b, l, h)),
        out_shape=jax.ShapeDtypeStruct((B, L, hp), out_dtype),
        compiler_params=pltpu.CompilerParams(
            dimension_semantics=("parallel", "parallel", "parallel"),
            vmem_limit_bytes=vmem_limit,
        ),
    )(image_feat, ques1_3d, w_img, b_img)

    # TODO(synk): nn.Dropout is identity at inference; training-mode dropout (scaled
    # Bernoulli mask via pltpu.prng_seed / prng_random_bits) is not implemented here.
    if hp != H:
        out = out[..., :H]
    return out


# ----------------------------------------------------------------------------- params
def init_params(key, img_feat_dim, txt_emb_dim, hidden_dim):
    """PyTorch nn.Linear weights are (out, in); stored transposed (in, out) so the
    kernel does row-major x @ W.  Master copies f32; bf16 copies fed to the kernel."""
    k1, k2, k3, k4 = jax.random.split(key, 4)
    s_img = 1.0 / math.sqrt(img_feat_dim)
    s_txt = 1.0 / math.sqrt(txt_emb_dim)
    w_img = jax.random.uniform(k1, (img_feat_dim, hidden_dim), jnp.float32, -s_img, s_img)
    b_img = jax.random.uniform(k2, (1, hidden_dim), jnp.float32, -s_img, s_img)
    w_q = jax.random.uniform(k3, (txt_emb_dim, hidden_dim), jnp.float32, -s_txt, s_txt)
    b_q = jax.random.uniform(k4, (1, hidden_dim), jnp.float32, -s_txt, s_txt)
    return dict(
        w_img_f32=w_img, w_q_f32=w_q, b_img=b_img, b_q=b_q,
        w_img_t=w_img.astype(jnp.bfloat16), w_q_t=w_q.astype(jnp.bfloat16),
    )


# ----------------------------------------------------------------------------- reference
def mfb_expand_ref(params, image_feat, question_embed):
    x = image_feat.astype(jnp.float32)
    q = question_embed.astype(jnp.float32)
    image1 = x @ params["w_img_f32"] + params["b_img"][0]
    ques1 = q @ params["w_q_f32"] + params["b_q"][0]
    if x.ndim == 3:
        ques1 = ques1[:, None, :]
    return image1 * ques1


# ----------------------------------------------------------------------------- main
if __name__ == "__main__":
    B, L = 2, 16                    # batch, num_location
    IMG_D, TXT_D, H = 64, 32, 128   # H multiple of 128 -> lane-dense output stores

    key = jax.random.PRNGKey(0)
    k_p, k_i, k_q, k_i2 = jax.random.split(key, 4)
    params = init_params(k_p, IMG_D, TXT_D, H)
    # Upstream activations in bf16 (halves the dominant HBM streams of this kernel).
    image_feat = jax.random.normal(k_i, (B, L, IMG_D), jnp.float32).astype(jnp.bfloat16)
    question_embed = jax.random.normal(k_q, (B, TXT_D), dtype=jnp.float32)

    # 3-D image-feature path (per-location expansion of ques1).
    out = jax.block_until_ready(mfb_expand_forward(params, image_feat, question_embed))
    ref = mfb_expand_ref(params, image_feat, question_embed)
    assert out.shape == ref.shape == (B, L, H)
    assert out.dtype == jnp.bfloat16
    # bf16 weights / activations / output vs f32 reference -> modest tolerance.
    assert jnp.allclose(out.astype(jnp.float32), ref, atol=5e-2, rtol=3e-2), \
        "3-D path kernel/reference mismatch"

    # 2-D image-feature path (no expansion branch in the module).
    image_feat_2d = jax.random.normal(k_i2, (B, IMG_D), jnp.float32).astype(jnp.bfloat16)
    out2 = jax.block_until_ready(mfb_expand_forward(params, image_feat_2d, question_embed))
    ref2 = mfb_expand_ref(params, image_feat_2d, question_embed)
    assert out2.shape == ref2.shape == (B, H)
    assert jnp.allclose(out2.astype(jnp.float32), ref2, atol=5e-2, rtol=3e-2), \
        "2-D path kernel/reference mismatch"

    print("KERNEL_OK")
</pallas_src>

<mosaic_0001>
module attributes {stable_mosaic.version = 11 : i64} {
  func.func @_linear_kernel(%arg0: i32, %arg1: memref<2x32xf32, #tpu.memory_space<vmem>>, %arg2: memref<32x128xbf16, #tpu.memory_space<vmem>>, %arg3: memref<1x128xf32, #tpu.memory_space<vmem>>, %arg4: memref<2x128xf32, #tpu.memory_space<vmem>>) attributes {dimension_semantics = [#tpu.dimension_semantics<parallel>], iteration_bounds = array<i64: 1>, scalar_prefetch = 0 : i64, scratch_operands = 0 : i64, tpu.core_type = #tpu.core_type<tc>, window_params = [{pipeline_mode = #tpu.pipeline_mode<synchronous>, transform_indices = @transform_0, window_bounds = array<i64: 2, 32>}, {transform_indices = @transform_1, window_bounds = array<i64: 32, 128>}, {transform_indices = @transform_2, window_bounds = array<i64: 1, 128>}, {transform_indices = @transform_3, window_bounds = array<i64: 2, 128>}]} {
    %c0 = arith.constant 0 : index
    %c0_0 = arith.constant 0 : index
    %0 = vector.load %arg1[%c0, %c0_0] : memref<2x32xf32, #tpu.memory_space<vmem>>, vector<2x32xf32>
    %1 = arith.truncf %0 : vector<2x32xf32> to vector<2x32xbf16>
    %c0_1 = arith.constant 0 : index
    %c0_2 = arith.constant 0 : index
    %2 = vector.load %arg2[%c0_1, %c0_2] : memref<32x128xbf16, #tpu.memory_space<vmem>>, vector<32x128xbf16>
    %cst = arith.constant dense<0.000000e+00> : vector<2x128xf32>
    %3 = tpu.matmul %1, %2, %cst {dimension_numbers = #tpu.dot_dimension_numbers<[1], [0], [0], [1], [0, 0, 1, 1], [], []>} : vector<2x32xbf16>, vector<32x128xbf16>, vector<2x128xf32> -> vector<2x128xf32>
    %c0_3 = arith.constant 0 : index
    %c0_4 = arith.constant 0 : index
    %4 = vector.load %arg3[%c0_3, %c0_4] : memref<1x128xf32, #tpu.memory_space<vmem>>, vector<1x128xf32>
    %5 = vector.broadcast %4 : vector<1x128xf32> to vector<2x128xf32>
    %6 = arith.addf %3, %5 : vector<2x128xf32>
    %c0_5 = arith.constant 0 : index
    %c0_6 = arith.constant 0 : index
    %7 = vector.load %arg4[%c0_5, %c0_6] : memref<2x128xf32, #tpu.memory_space<vmem>>, vector<2x128xf32>
    tpu.vector_store %arg4[%c0_5, %c0_6], %6 {strides = array<i32>} : memref<2x128xf32, #tpu.memory_space<vmem>>, vector<2x128xf32>,
    return
  }
  func.func @transform_0(%arg0: i32) -> (i32, i32) {
    %c0_i32 = arith.constant 0 : i32
    %c0_i32_0 = arith.constant 0 : i32
    %c0_i32_1 = arith.constant 0 : i32
    return %c0_i32, %c0_i32_0 : i32, i32
  }
  func.func @transform_1(%arg0: i32) -> (i32, i32) {
    %c0_i32 = arith.constant 0 : i32
    %c0_i32_0 = arith.constant 0 : i32
    return %c0_i32, %arg0 : i32, i32
  }
  func.func @transform_2(%arg0: i32) -> (i32, i32) {
    %c0_i32 = arith.constant 0 : i32
    %c0_i32_0 = arith.constant 0 : i32
    return %c0_i32, %arg0 : i32, i32
  }
  func.func @transform_3(%arg0: i32) -> (i32, i32) {
    %c0_i32 = arith.constant 0 : i32
    %c0_i32_0 = arith.constant 0 : i32
    return %c0_i32, %arg0 : i32, i32
  }
}

</mosaic_0001>

<bundles_post_ra>
// kernel: tpu_custom_call.1
= control target key start
LH: loop header
LB: loop body
LE: loop exit
PB: predicated region body
PF: predicated region fallthrough
CT: control target
= control target key end

     0   :  { %8 = vsyncpa [#allocation3], 0  ;;  %s257_s0 = inlined_call_operand.hbm [shape: f32[2,32], index: 0, kind: input, shape index: {}]   ;;  %s258_s1 = inlined_call_operand.hbm [shape: bf16[32,128], index: 1, kind: input, shape index: {}]   ;;  %s259_s2 = inlined_call_operand.vmem [shape: f32[1,128], index: 2, kind: input, shape index: {}]   ;;  %s260_s3 = inlined_call_operand.hbm [shape: f32[2,128], index: 3, kind: output, shape index: {}]  }
   0x1   :  { %9 = vsyncpa [#allocation6], 0 }
   0x2   :  { %10 = vsyncpa [#allocation4], 0  ;;  %s218_s12 = smov [#allocation2]   ;;  %s219_s14 = smov [#allocation5]  }
   0x3   :  { %s17_s13 = sshll.u32 %s218_s12, 4  ;;  %s26_s15 = sshll.u32 %s219_s14, 4  ;;  %s18_s13 = int_to_ptr.vmem [resolvable:$true] %s17_s13  ;;  %s27_s15 = int_to_ptr.vmem [resolvable:$true] %s26_s15 }
   0x4   :  { %s160_s16 = scalar_lea.vmem %s18_s13, 32  ;;  %p165_p1 = scmp.lt.s32.totalorder %s18_s13, %s18_s13 }
   0x5   :  { %p161_p0 = scmp.ne.s32.totalorder %s18_s13, %s160_s16  ;;  %p166_p2 = scmp.lt.s32.totalorder %s160_s16, %s160_s16 }
   0x7   :  { %p167_p3 = por %p166_p2, %p165_p1 }
   0x9   :  { %p168_p4 = pnand %p167_p3, %p161_p0 }
   0xb   :  { %171 = shalt.err (!%p168_p4)
}
   0xc   :  { %20 = dma.hbm_to_vmem [thread:$0]  %s257_s0, 32, %s18_s13, [#allocation3]  }
   0xd   :  { %s180_s19 = scalar_lea.vmem %s27_s15, 256  ;;  %p185_p6 = scmp.lt.s32.totalorder %s27_s15, %s27_s15 }
   0xe   :  { %p181_p5 = scmp.ne.s32.totalorder %s27_s15, %s180_s19  ;;  %p186_p7 = scmp.lt.s32.totalorder %s180_s19, %s180_s19 }
  0x10   :  { %p187_p8 = por %p186_p7, %p185_p6 }
  0x12   :  { %p188_p9 = pnand %p187_p8, %p181_p5 }
  0x14   :  { %191 = shalt.err (!%p188_p9)
}
  0x15   :  { %s220_s20 = smov 64   ;;  %s221_s21 = smov 4  }
  0x16   :  { %32 = dma.hbm_to_vmem [thread:$0]  %s258_s1, 256, %s27_s15, [#allocation6], %s220_s20, %s220_s20, %s221_s21  }
  0x17   :  { %212 = dma.done.wait [#allocation3], 32  }
  0x18   :  { %213 = vsyncadd [#allocation3], 4294967264 }
  0x19   :  { %214 = dma.done.wait [#allocation6], 256  }
  0x1a   :  { %215 = vsyncadd [#allocation6], 4294967040  ;;  %v222_v0 = vmov 0.0   ;;  %vm223_vm0 = vmmov 0   ;;  %v150_v1 = vld [vmem:[#allocation5 + $0x8] sm:$0xff]   ;;  %v151_v2 = vld [vmem:[#allocation5] sm:$0xff]  }
  0x1b   :  { %135 = vmatprep.subr.bf16.mxu0 %v222_v0  ;;  %139 = vmatprep.mubr.msk.bf16.mxu0 %vm223_vm0, %v222_v0  ;;  %v42_v3 = vld [vmem:[#allocation2] sm:$0x3]  ;;  %vm67_vm1 = vcmask 261120   ;;  %s224_s1 = smov [#allocation7]  }
  0x1c   :  { %136 = vmatpush3.bf16.msra.mxu0 %v150_v1  ;;  %v43_v4 = vpack.c.bf16 %v42_v3, %v42_v3  ;;  %v128_v5 = vld [vmem:[%s259_s2] ss:$0 sm:$0xff]  ;;  %s118_s25 = sshll.u32 %s224_s1, 4  ;;  %s119_s25 = int_to_ptr.vmem [resolvable:$true] %s118_s25 }
  0x1d   :  { %137 = vmatprep.subr.bf16.mxu0 %v222_v0  ;;  %s192_s26 = scalar_lea.vmem %s119_s25, 32  ;;  %p197_p11 = scmp.lt.s32.totalorder %s119_s25, %s119_s25 }
  0x1e   :  { %p193_p10 = scmp.ne.s32.totalorder %s119_s25, %s192_s26  ;;  %p198_p12 = scmp.lt.s32.totalorder %s192_s26, %s192_s26 }
  0x20   :  { %138 = vmatpush3.bf16.msra.mxu0 %v151_v2  ;;  %p199_p13 = por %p198_p12, %p197_p11 }
  0x22   :  { %p200_p0 = pnand %p199_p13, %p193_p10 }
  0x23   :  { %140 = vmatmul.mubr.msk.bf16.vlgmr.msra.gmra.mxu0 %vm67_vm1, %v43_v4 }
  0xe3   :  { %v105_v6 = vpop.f32.mrf.mxu0 }
  0xe4   :  { %v106_v7 = vadd.f32 %v128_v5, %v105_v6 }
  0xe5   :  { %v141_v8 = vpop.f32.mrf.mxu0 }
  0xe6   :  { %111 = vst [vmem:[#allocation7] sm:$0x3] %v106_v7 }
  0xe7   :  { %v108_v9 = vpop.f32.mrf.mxu0 }
  0xe8   :  { %203 = shalt.err (!%p200_p0)
}
  0xe9   :  { %121 = dma.vmem_to_hbm [thread:$0]  %s119_s25, 32, %s260_s3, [#allocation4]   ;;  %v142_v10 = vpop.f32.mrf.mxu0 }
  0xea   :  { %216 = dma.done.wait [#allocation4], 32  }
  0xeb   :  { %217 = vsyncadd [#allocation4], 4294967264 }
  0xec   :  { %125 = vsyncpa [#allocation3], 1 }
  0xed   :  { %126 = vsyncpa [#allocation6], 1 }
  0xee   :  { %127 = vsyncpa [#allocation4], 1 }

</bundles_post_ra>
